<compile_context>
chip_gen: v6e
topology: v6e:2x2x1
jax: 0.10.0
libtpu: 0.0.40
codegen_flags: <defaults>
</compile_context>

<pallas_src>
import functools
import math

import jax
import jax.numpy as jnp
from jax import lax
from jax.experimental import pallas as pl
from jax.experimental.pallas import tpu as pltpu

_MASK_VALUE = -1e30   # finite: no NaN even for fully-masked rows


def _vmem_limit_bytes():
    """Generation-aware VMEM budget (3/4 of physical, capped at 100 MiB)."""
    try:
        cap = int(pltpu.get_tpu_info().vmem_capacity_bytes)
    except Exception:  # pragma: no cover - conservative fallback
        cap = 64 * 1024 * 1024
    return max(32 * 1024 * 1024, min(3 * cap // 4, 100 * 1024 * 1024))


def _pick_tile(n, cap):
    """Largest tile <= cap that divides n (falls back to full n)."""
    # TODO(synk): pad S to a multiple of 128 (with an in-kernel bounds mask)
    #             for awkward sequence lengths instead of tiny fallback tiles.
    for t in (cap, 1024, 512, 256, 128, 64, 32, 16, 8):
        if t <= n and n % t == 0:
            return t
    return n


def _pick_head_group(num_heads, d_model, head_dim, itemsize, budget_bytes):
    """Largest divisor of num_heads whose fused QKV weights fit the budget
    (double-buffered)."""
    for hg in range(num_heads, 0, -1):
        if num_heads % hg:
            continue
        if 2 * hg * d_model * 3 * head_dim * itemsize <= budget_bytes:
            return hg
    return 1


# ---------------------------------------------------------------------------
# Kernel 1: fused QKV projection -> head-major [B, H, S, head_dim].
# One x tile, one fused-weight block per head group; x is DMA'd once per
# (batch, s-tile) because the head-group axis is innermost and its x index
# repeats.  Each head does a single [ts, D] @ [D, 3*hd] MXU pass.
# ---------------------------------------------------------------------------
def _qkv_proj_kernel(x_ref, w_ref, q_ref, k_ref, v_ref, *, head_dim):
    x = x_ref[...]                                        # [ts, D], input dtype
    heads_in_group = w_ref.shape[0]
    for h in range(heads_in_group):                       # static unroll
        y = jnp.dot(x, w_ref[h], preferred_element_type=jnp.float32)  # [ts,3hd]
        q_ref[h] = y[:, :head_dim].astype(q_ref.dtype)
        k_ref[h] = y[:, head_dim:2 * head_dim].astype(k_ref.dtype)
        v_ref[h] = y[:, 2 * head_dim:].astype(v_ref.dtype)


# ---------------------------------------------------------------------------
# Kernel 2: flash attention (online softmax) + fused output projection.
# Grid (B, q-tiles, H, kv-tiles); Wo is fully VMEM-resident; per-head output
# contributions accumulate into a lane-dense [tq, D] f32 scratch written once
# per (batch, q-tile).
# ---------------------------------------------------------------------------
def _flash_attn_kernel(q_ref, k_ref, v_ref, wo_ref, o_ref,
                       m_sc, l_sc, acc_sc, out_sc,
                       *, block_q, block_kv, use_mask):
    qi = pl.program_id(1)
    h = pl.program_id(2)
    ki = pl.program_id(3)
    nh = pl.num_programs(2)
    nk = pl.num_programs(3)

    @pl.when(jnp.logical_and(h == 0, ki == 0))
    def _init_out():
        out_sc[...] = jnp.zeros(out_sc.shape, out_sc.dtype)

    @pl.when(ki == 0)
    def _init_head_state():
        m_sc[...] = jnp.full(m_sc.shape, _MASK_VALUE, m_sc.dtype)
        l_sc[...] = jnp.zeros(l_sc.shape, l_sc.dtype)
        acc_sc[...] = jnp.zeros(acc_sc.shape, acc_sc.dtype)

    def _accumulate(masked):
        q = q_ref[...]                                    # [tq, hd] (pre-scaled)
        k = k_ref[...]                                    # [tk, hd]
        v = v_ref[...]                                    # [tk, hd]
        # q @ k.T via contraction dims -> no materialized transpose.
        s = lax.dot_general(q, k, (((1,), (1,)), ((), ())),
                            preferred_element_type=jnp.float32)  # [tq, tk] f32
        if masked:
            q_pos = qi * block_q + lax.broadcasted_iota(
                jnp.int32, (block_q, block_kv), 0)
            k_pos = ki * block_kv + lax.broadcasted_iota(
                jnp.int32, (block_q, block_kv), 1)
            s = jnp.where(k_pos <= q_pos, s, _MASK_VALUE)

        m_prev = m_sc[...]
        m_new = jnp.maximum(m_prev, jnp.max(s, axis=-1, keepdims=True))
        alpha = jnp.exp(m_prev - m_new)
        p = jnp.exp(s - m_new)
        l_sc[...] = alpha * l_sc[...] + jnp.sum(p, axis=-1, keepdims=True)
        acc_sc[...] = alpha * acc_sc[...] + jnp.dot(
            p.astype(v.dtype), v, preferred_element_type=jnp.float32)
        m_sc[...] = m_new

    if use_mask:
        first_q = qi * block_q
        last_q = first_q + (block_q - 1)
        first_k = ki * block_kv
        last_k = first_k + (block_kv - 1)
        fully_visible = last_k <= first_q               # below diagonal: no mask
        on_diagonal = jnp.logical_and(first_k <= last_q,
                                      jnp.logical_not(fully_visible))

        @pl.when(fully_visible)
        def _fast_path():
            _accumulate(masked=False)

        @pl.when(on_diagonal)
        def _diag_path():
            _accumulate(masked=True)
        # Tiles strictly above the diagonal are skipped entirely; their K/V
        # index maps are clamped in the wrapper so the DMA is also elided.
    else:
        _accumulate(masked=False)

    @pl.when(ki == nk - 1)
    def _project_head():
        inv_l = pl.reciprocal(l_sc[...], approx=True)            # EUP slot
        attn = acc_sc[...] * inv_l                               # [tq, hd] f32
        out_sc[...] += jnp.dot(attn.astype(wo_ref.dtype), wo_ref[h],
                               preferred_element_type=jnp.float32)

    @pl.when(jnp.logical_and(ki == nk - 1, h == nh - 1))
    def _write_out():
        o_ref[...] = out_sc[...].astype(o_ref.dtype)


# ---------------------------------------------------------------------------
# Wrapper
# ---------------------------------------------------------------------------
def multi_head_self_attention(x, wq, wk, wv, wo, *, num_heads, use_mask=True,
                              block_s=512, block_q=256, block_kv=256):
    B, S, D = x.shape
    assert D % num_heads == 0
    hd = D // num_heads
    scale = 1.0 / math.sqrt(hd)
    vmem_limit = _vmem_limit_bytes()

    # Host-side weight re-arrangement (once, tiny):
    #   wq_hm[h, d, e] = wq[h*hd + e, d] * scale   -> q_h = x @ wq_hm[h]
    #   w_qkv[h]       = concat(Wq_h, Wk_h, Wv_h)  -> one [D, 3*hd] MXU RHS
    #   wo_hm[h, e, o] = wo[o, h*hd + e]           -> y  += attn_h @ wo_hm[h]
    wq_hm = wq.reshape(num_heads, hd, D).transpose(0, 2, 1) * scale
    wk_hm = wk.reshape(num_heads, hd, D).transpose(0, 2, 1)
    wv_hm = wv.reshape(num_heads, hd, D).transpose(0, 2, 1)
    w_qkv = jnp.concatenate([wq_hm, wk_hm, wv_hm], axis=-1)      # [H, D, 3*hd]
    wo_hm = wo.T.reshape(num_heads, hd, D)                       # [H, hd, D]

    ts = _pick_tile(S, block_s)
    tq = _pick_tile(S, block_q)
    tk = _pick_tile(S, block_kv)

    # Largest head group whose fused weights fit comfortably in VMEM; when it
    # equals num_heads the weight block index is constant -> DMA'd once.
    hg = _pick_head_group(num_heads, D, hd, w_qkv.dtype.itemsize,
                          vmem_limit // 3)
    G = num_heads // hg
    w_qkv = w_qkv.reshape(G, hg, D, 3 * hd)

    # ---- Kernel 1: QKV projection to head-major [B, H, S, hd]. ----
    qkv_shape = jax.ShapeDtypeStruct((B, num_heads, S, hd), x.dtype)
    q, k, v = pl.pallas_call(
        functools.partial(_qkv_proj_kernel, head_dim=hd),
        out_shape=(qkv_shape, qkv_shape, qkv_shape),
        grid_spec=pltpu.PrefetchScalarGridSpec(
            num_scalar_prefetch=0,
            grid=(B, S // ts, G),                 # head-group axis innermost:
            in_specs=[                            # x index repeats -> DMA elided
                pl.BlockSpec((None, ts, D), lambda b, s, g: (b, s, 0)),
                pl.BlockSpec((None, hg, D, 3 * hd),
                             lambda b, s, g: (g, 0, 0, 0)),
            ],
            out_specs=[
                pl.BlockSpec((None, hg, ts, hd), lambda b, s, g: (b, g, s, 0)),
                pl.BlockSpec((None, hg, ts, hd), lambda b, s, g: (b, g, s, 0)),
                pl.BlockSpec((None, hg, ts, hd), lambda b, s, g: (b, g, s, 0)),
            ],
        ),
        compiler_params=pltpu.CompilerParams(
            dimension_semantics=("parallel", "parallel", "arbitrary"),
            vmem_limit_bytes=vmem_limit),
    )(x, w_qkv)

    # ---- Kernel 2: flash attention + fused output projection. ----
    if use_mask:
        # Clamp K/V block index to the causal diagonal: above-diagonal steps
        # repeat the previous block index, so Pallas elides the fetch.
        def kv_index(b, qi, h, ki):
            last_ki = (qi * tq + (tq - 1)) // tk
            return (b, h, jnp.minimum(ki, last_ki), 0)
    else:
        def kv_index(b, qi, h, ki):
            return (b, h, ki, 0)

    kernel = functools.partial(_flash_attn_kernel, block_q=tq, block_kv=tk,
                               use_mask=use_mask)
    out = pl.pallas_call(
        kernel,
        out_shape=jax.ShapeDtypeStruct((B, S, D), x.dtype),
        grid_spec=pltpu.PrefetchScalarGridSpec(
            num_scalar_prefetch=0,
            grid=(B, S // tq, num_heads, S // tk),
            in_specs=[
                pl.BlockSpec((None, None, tq, hd),
                             lambda b, qi, h, ki: (b, h, qi, 0)),   # Q
                pl.BlockSpec((None, None, tk, hd), kv_index),       # K
                pl.BlockSpec((None, None, tk, hd), kv_index),       # V
                pl.BlockSpec((num_heads, hd, D),
                             lambda b, qi, h, ki: (0, 0, 0)),        # Wo (whole)
            ],
            out_specs=pl.BlockSpec((None, tq, D),
                                   lambda b, qi, h, ki: (b, qi, 0)),
            scratch_shapes=[
                pltpu.VMEM((tq, 1), jnp.float32),    # running max
                pltpu.VMEM((tq, 1), jnp.float32),    # running denominator
                pltpu.VMEM((tq, hd), jnp.float32),   # running P@V accumulator
                pltpu.VMEM((tq, D), jnp.float32),    # Wo-projected output accum
            ],
        ),
        compiler_params=pltpu.CompilerParams(
            dimension_semantics=("parallel", "parallel", "arbitrary", "arbitrary"),
            vmem_limit_bytes=vmem_limit),
    )(q, k, v, wo_hm)
    return out


# ---------------------------------------------------------------------------
# Pure-JAX reference mirroring the PyTorch module semantics.
# ---------------------------------------------------------------------------
def mhsa_reference(x, wq, wk, wv, wo, *, num_heads, use_mask=True):
    B, S, D = x.shape
    hd = D // num_heads
    q = jnp.einsum("bsd,ed->bse", x, wq)
    k = jnp.einsum("bsd,ed->bse", x, wk)
    v = jnp.einsum("bsd,ed->bse", x, wv)

    def split(t):  # [B,S,D] -> [B,H,S,hd]
        return t.reshape(B, S, num_heads, hd).transpose(0, 2, 1, 3)

    q, k, v = split(q), split(k), split(v)
    scores = jnp.einsum("bhqd,bhkd->bhqk", q, k) / math.sqrt(hd)
    if use_mask:
        causal = jnp.tril(jnp.ones((S, S), dtype=bool))
        scores = jnp.where(causal, scores, -jnp.inf)
    w = jax.nn.softmax(scores, axis=-1)
    o = jnp.einsum("bhqk,bhkd->bhqd", w, v)
    o = o.transpose(0, 2, 1, 3).reshape(B, S, D)
    return jnp.einsum("bsd,ed->bse", o, wo)


if __name__ == "__main__":
    # Small shapes consistent with the module: batch=2, seq=8, d_model=32, heads=4.
    B, S, D, H = 2, 8, 32, 4

    key = jax.random.PRNGKey(0)
    kx, kq, kk, kv_, ko = jax.random.split(key, 5)

    x = jax.random.normal(kx, (B, S, D), dtype=jnp.float32)
    wq = 0.02 * jax.random.normal(kq, (D, D), dtype=jnp.float32)
    wk = 0.02 * jax.random.normal(kk, (D, D), dtype=jnp.float32)
    wv = 0.02 * jax.random.normal(kv_, (D, D), dtype=jnp.float32)
    wo = 0.02 * jax.random.normal(ko, (D, D), dtype=jnp.float32)

    out = multi_head_self_attention(x, wq, wk, wv, wo, num_heads=H, use_mask=True)
    out = jax.block_until_ready(out)
    ref = mhsa_reference(x, wq, wk, wv, wo, num_heads=H, use_mask=True)
    assert out.shape == (B, S, D)
    assert jnp.allclose(out, ref, atol=2e-3, rtol=2e-3), "causal mismatch vs reference"

    out_nm = multi_head_self_attention(x, wq, wk, wv, wo, num_heads=H, use_mask=False)
    out_nm = jax.block_until_ready(out_nm)
    ref_nm = mhsa_reference(x, wq, wk, wv, wo, num_heads=H, use_mask=False)
    assert jnp.allclose(out_nm, ref_nm, atol=2e-3, rtol=2e-3), "no-mask mismatch vs reference"

    # Multi-tile check: exercises the causal diagonal split, the clamped K/V
    # index maps, and the head-grouped projection on a larger (still small) shape.
    B2, S2, D2, H2 = 2, 256, 128, 4
    k2 = jax.random.PRNGKey(1)
    kx2, kq2, kk2, kv2, ko2 = jax.random.split(k2, 5)
    x2 = jax.random.normal(kx2, (B2, S2, D2), dtype=jnp.float32)
    wq2 = 0.02 * jax.random.normal(kq2, (D2, D2), dtype=jnp.float32)
    wk2 = 0.02 * jax.random.normal(kk2, (D2, D2), dtype=jnp.float32)
    wv2 = 0.02 * jax.random.normal(kv2, (D2, D2), dtype=jnp.float32)
    wo2 = 0.02 * jax.random.normal(ko2, (D2, D2), dtype=jnp.float32)

    out2 = multi_head_self_attention(x2, wq2, wk2, wv2, wo2, num_heads=H2,
                                     use_mask=True,
                                     block_s=128, block_q=128, block_kv=128)
    out2 = jax.block_until_ready(out2)
    ref2 = mhsa_reference(x2, wq2, wk2, wv2, wo2, num_heads=H2, use_mask=True)
    assert jnp.allclose(out2, ref2, atol=2e-3, rtol=2e-3), "multi-tile mismatch vs reference"

    print("KERNEL_OK")
</pallas_src>

<mosaic_0001>
module attributes {stable_mosaic.version = 11 : i64} {
  func.func @_qkv_proj_kernel(%arg0: i32, %arg1: i32, %arg2: i32, %arg3: memref<1x8x32xf32, #tpu.memory_space<vmem>>, %arg4: memref<1x4x32x24xf32, #tpu.memory_space<vmem>>, %arg5: memref<1x4x8x8xf32, #tpu.memory_space<vmem>>, %arg6: memref<1x4x8x8xf32, #tpu.memory_space<vmem>>, %arg7: memref<1x4x8x8xf32, #tpu.memory_space<vmem>>) attributes {dimension_semantics = [#tpu.dimension_semantics<parallel>, #tpu.dimension_semantics<parallel>, #tpu.dimension_semantics<arbitrary>], iteration_bounds = array<i64: 2, 1, 1>, scalar_prefetch = 0 : i64, scratch_operands = 0 : i64, tpu.core_type = #tpu.core_type<tc>, window_params = [{transform_indices = @transform_0, window_bounds = array<i64: 1, 8, 32>}, {transform_indices = @transform_1, window_bounds = array<i64: 1, 4, 32, 24>}, {transform_indices = @transform_2, window_bounds = array<i64: 1, 4, 8, 8>}, {transform_indices = @transform_3, window_bounds = array<i64: 1, 4, 8, 8>}, {transform_indices = @transform_4, window_bounds = array<i64: 1, 4, 8, 8>}]} {
    %c0 = arith.constant 0 : index
    %c0_0 = arith.constant 0 : index
    %c0_1 = arith.constant 0 : index
    %0 = vector.load %arg3[%c0, %c0_0, %c0_1] : memref<1x8x32xf32, #tpu.memory_space<vmem>>, vector<1x8x32xf32>
    %1 = vector.shape_cast %0 : vector<1x8x32xf32> to vector<8x32xf32>
    %c0_2 = arith.constant 0 : index
    %c0_3 = arith.constant 0 : index
    %c0_4 = arith.constant 0 : index
    %c0_5 = arith.constant 0 : index
    %2 = vector.load %arg4[%c0_2, %c0_3, %c0_4, %c0_5] : memref<1x4x32x24xf32, #tpu.memory_space<vmem>>, vector<1x1x32x24xf32>
    %3 = vector.shape_cast %2 : vector<1x1x32x24xf32> to vector<32x24xf32>
    %cst = arith.constant dense<0.000000e+00> : vector<8x24xf32>
    %4 = tpu.matmul %1, %3, %cst {dimension_numbers = #tpu.dot_dimension_numbers<[1], [0], [0], [1], [0, 0, 1, 1], [], []>} : vector<8x32xf32>, vector<32x24xf32>, vector<8x24xf32> -> vector<8x24xf32>
    %5 = vector.extract_strided_slice %4 {offsets = [0, 0], sizes = [8, 8], strides = [1, 1]} : vector<8x24xf32> to vector<8x8xf32>
    %c0_6 = arith.constant 0 : index
    %c0_7 = arith.constant 0 : index
    %c0_8 = arith.constant 0 : index
    %c0_9 = arith.constant 0 : index
    %6 = vector.load %arg5[%c0_6, %c0_7, %c0_8, %c0_9] : memref<1x4x8x8xf32, #tpu.memory_space<vmem>>, vector<1x1x8x8xf32>
    %7 = vector.shape_cast %6 : vector<1x1x8x8xf32> to vector<8x8xf32>
    %8 = vector.shape_cast %5 : vector<8x8xf32> to vector<1x1x8x8xf32>
    tpu.vector_store %arg5[%c0_6, %c0_7, %c0_8, %c0_9], %8 {strides = array<i32>} : memref<1x4x8x8xf32, #tpu.memory_space<vmem>>, vector<1x1x8x8xf32>,
    %9 = vector.extract_strided_slice %4 {offsets = [0, 8], sizes = [8, 8], strides = [1, 1]} : vector<8x24xf32> to vector<8x8xf32>
    %c0_10 = arith.constant 0 : index
    %c0_11 = arith.constant 0 : index
    %c0_12 = arith.constant 0 : index
    %c0_13 = arith.constant 0 : index
    %10 = vector.load %arg6[%c0_10, %c0_11, %c0_12, %c0_13] : memref<1x4x8x8xf32, #tpu.memory_space<vmem>>, vector<1x1x8x8xf32>
    %11 = vector.shape_cast %10 : vector<1x1x8x8xf32> to vector<8x8xf32>
    %12 = vector.shape_cast %9 : vector<8x8xf32> to vector<1x1x8x8xf32>
    tpu.vector_store %arg6[%c0_10, %c0_11, %c0_12, %c0_13], %12 {strides = array<i32>} : memref<1x4x8x8xf32, #tpu.memory_space<vmem>>, vector<1x1x8x8xf32>,
    %13 = vector.extract_strided_slice %4 {offsets = [0, 16], sizes = [8, 8], strides = [1, 1]} : vector<8x24xf32> to vector<8x8xf32>
    %c0_14 = arith.constant 0 : index
    %c0_15 = arith.constant 0 : index
    %c0_16 = arith.constant 0 : index
    %c0_17 = arith.constant 0 : index
    %14 = vector.load %arg7[%c0_14, %c0_15, %c0_16, %c0_17] : memref<1x4x8x8xf32, #tpu.memory_space<vmem>>, vector<1x1x8x8xf32>
    %15 = vector.shape_cast %14 : vector<1x1x8x8xf32> to vector<8x8xf32>
    %16 = vector.shape_cast %13 : vector<8x8xf32> to vector<1x1x8x8xf32>
    tpu.vector_store %arg7[%c0_14, %c0_15, %c0_16, %c0_17], %16 {strides = array<i32>} : memref<1x4x8x8xf32, #tpu.memory_space<vmem>>, vector<1x1x8x8xf32>,
    %c0_18 = arith.constant 0 : index
    %c1 = arith.constant 1 : index
    %c0_19 = arith.constant 0 : index
    %c0_20 = arith.constant 0 : index
    %17 = vector.load %arg4[%c0_18, %c1, %c0_19, %c0_20] : memref<1x4x32x24xf32, #tpu.memory_space<vmem>>, vector<1x1x32x24xf32>
    %18 = vector.shape_cast %17 : vector<1x1x32x24xf32> to vector<32x24xf32>
    %cst_21 = arith.constant dense<0.000000e+00> : vector<8x24xf32>
    %19 = tpu.matmul %1, %18, %cst_21 {dimension_numbers = #tpu.dot_dimension_numbers<[1], [0], [0], [1], [0, 0, 1, 1], [], []>} : vector<8x32xf32>, vector<32x24xf32>, vector<8x24xf32> -> vector<8x24xf32>
    %20 = vector.extract_strided_slice %19 {offsets = [0, 0], sizes = [8, 8], strides = [1, 1]} : vector<8x24xf32> to vector<8x8xf32>
    %c0_22 = arith.constant 0 : index
    %c1_23 = arith.constant 1 : index
    %c0_24 = arith.constant 0 : index
    %c0_25 = arith.constant 0 : index
    %21 = vector.load %arg5[%c0_22, %c1_23, %c0_24, %c0_25] : memref<1x4x8x8xf32, #tpu.memory_space<vmem>>, vector<1x1x8x8xf32>
    %22 = vector.shape_cast %21 : vector<1x1x8x8xf32> to vector<8x8xf32>
    %23 = vector.shape_cast %20 : vector<8x8xf32> to vector<1x1x8x8xf32>
    tpu.vector_store %arg5[%c0_22, %c1_23, %c0_24, %c0_25], %23 {strides = array<i32>} : memref<1x4x8x8xf32, #tpu.memory_space<vmem>>, vector<1x1x8x8xf32>,
    %24 = vector.extract_strided_slice %19 {offsets = [0, 8], sizes = [8, 8], strides = [1, 1]} : vector<8x24xf32> to vector<8x8xf32>
    %c0_26 = arith.constant 0 : index
    %c1_27 = arith.constant 1 : index
    %c0_28 = arith.constant 0 : index
    %c0_29 = arith.constant 0 : index
    %25 = vector.load %arg6[%c0_26, %c1_27, %c0_28, %c0_29] : memref<1x4x8x8xf32, #tpu.memory_space<vmem>>, vector<1x1x8x8xf32>
    %26 = vector.shape_cast %25 : vector<1x1x8x8xf32> to vector<8x8xf32>
    %27 = vector.shape_cast %24 : vector<8x8xf32> to vector<1x1x8x8xf32>
    tpu.vector_store %arg6[%c0_26, %c1_27, %c0_28, %c0_29], %27 {strides = array<i32>} : memref<1x4x8x8xf32, #tpu.memory_space<vmem>>, vector<1x1x8x8xf32>,
    %28 = vector.extract_strided_slice %19 {offsets = [0, 16], sizes = [8, 8], strides = [1, 1]} : vector<8x24xf32> to vector<8x8xf32>
    %c0_30 = arith.constant 0 : index
    %c1_31 = arith.constant 1 : index
    %c0_32 = arith.constant 0 : index
    %c0_33 = arith.constant 0 : index
    %29 = vector.load %arg7[%c0_30, %c1_31, %c0_32, %c0_33] : memref<1x4x8x8xf32, #tpu.memory_space<vmem>>, vector<1x1x8x8xf32>
    %30 = vector.shape_cast %29 : vector<1x1x8x8xf32> to vector<8x8xf32>
    %31 = vector.shape_cast %28 : vector<8x8xf32> to vector<1x1x8x8xf32>
    tpu.vector_store %arg7[%c0_30, %c1_31, %c0_32, %c0_33], %31 {strides = array<i32>} : memref<1x4x8x8xf32, #tpu.memory_space<vmem>>, vector<1x1x8x8xf32>,
    %c0_34 = arith.constant 0 : index
    %c2 = arith.constant 2 : index
    %c0_35 = arith.constant 0 : index
    %c0_36 = arith.constant 0 : index
    %32 = vector.load %arg4[%c0_34, %c2, %c0_35, %c0_36] : memref<1x4x32x24xf32, #tpu.memory_space<vmem>>, vector<1x1x32x24xf32>
    %33 = vector.shape_cast %32 : vector<1x1x32x24xf32> to vector<32x24xf32>
    %cst_37 = arith.constant dense<0.000000e+00> : vector<8x24xf32>
    %34 = tpu.matmul %1, %33, %cst_37 {dimension_numbers = #tpu.dot_dimension_numbers<[1], [0], [0], [1], [0, 0, 1, 1], [], []>} : vector<8x32xf32>, vector<32x24xf32>, vector<8x24xf32> -> vector<8x24xf32>
    %35 = vector.extract_strided_slice %34 {offsets = [0, 0], sizes = [8, 8], strides = [1, 1]} : vector<8x24xf32> to vector<8x8xf32>
    %c0_38 = arith.constant 0 : index
    %c2_39 = arith.constant 2 : index
    %c0_40 = arith.constant 0 : index
    %c0_41 = arith.constant 0 : index
    %36 = vector.load %arg5[%c0_38, %c2_39, %c0_40, %c0_41] : memref<1x4x8x8xf32, #tpu.memory_space<vmem>>, vector<1x1x8x8xf32>
    %37 = vector.shape_cast %36 : vector<1x1x8x8xf32> to vector<8x8xf32>
    %38 = vector.shape_cast %35 : vector<8x8xf32> to vector<1x1x8x8xf32>
    tpu.vector_store %arg5[%c0_38, %c2_39, %c0_40, %c0_41], %38 {strides = array<i32>} : memref<1x4x8x8xf32, #tpu.memory_space<vmem>>, vector<1x1x8x8xf32>,
    %39 = vector.extract_strided_slice %34 {offsets = [0, 8], sizes = [8, 8], strides = [1, 1]} : vector<8x24xf32> to vector<8x8xf32>
    %c0_42 = arith.constant 0 : index
    %c2_43 = arith.constant 2 : index
    %c0_44 = arith.constant 0 : index
    %c0_45 = arith.constant 0 : index
    %40 = vector.load %arg6[%c0_42, %c2_43, %c0_44, %c0_45] : memref<1x4x8x8xf32, #tpu.memory_space<vmem>>, vector<1x1x8x8xf32>
    %41 = vector.shape_cast %40 : vector<1x1x8x8xf32> to vector<8x8xf32>
    %42 = vector.shape_cast %39 : vector<8x8xf32> to vector<1x1x8x8xf32>
    tpu.vector_store %arg6[%c0_42, %c2_43, %c0_44, %c0_45], %42 {strides = array<i32>} : memref<1x4x8x8xf32, #tpu.memory_space<vmem>>, vector<1x1x8x8xf32>,
    %43 = vector.extract_strided_slice %34 {offsets = [0, 16], sizes = [8, 8], strides = [1, 1]} : vector<8x24xf32> to vector<8x8xf32>
    %c0_46 = arith.constant 0 : index
    %c2_47 = arith.constant 2 : index
    %c0_48 = arith.constant 0 : index
    %c0_49 = arith.constant 0 : index
    %44 = vector.load %arg7[%c0_46, %c2_47, %c0_48, %c0_49] : memref<1x4x8x8xf32, #tpu.memory_space<vmem>>, vector<1x1x8x8xf32>
    %45 = vector.shape_cast %44 : vector<1x1x8x8xf32> to vector<8x8xf32>
    %46 = vector.shape_cast %43 : vector<8x8xf32> to vector<1x1x8x8xf32>
    tpu.vector_store %arg7[%c0_46, %c2_47, %c0_48, %c0_49], %46 {strides = array<i32>} : memref<1x4x8x8xf32, #tpu.memory_space<vmem>>, vector<1x1x8x8xf32>,
    %c0_50 = arith.constant 0 : index
    %c3 = arith.constant 3 : index
    %c0_51 = arith.constant 0 : index
    %c0_52 = arith.constant 0 : index
    %47 = vector.load %arg4[%c0_50, %c3, %c0_51, %c0_52] : memref<1x4x32x24xf32, #tpu.memory_space<vmem>>, vector<1x1x32x24xf32>
    %48 = vector.shape_cast %47 : vector<1x1x32x24xf32> to vector<32x24xf32>
    %cst_53 = arith.constant dense<0.000000e+00> : vector<8x24xf32>
    %49 = tpu.matmul %1, %48, %cst_53 {dimension_numbers = #tpu.dot_dimension_numbers<[1], [0], [0], [1], [0, 0, 1, 1], [], []>} : vector<8x32xf32>, vector<32x24xf32>, vector<8x24xf32> -> vector<8x24xf32>
    %50 = vector.extract_strided_slice %49 {offsets = [0, 0], sizes = [8, 8], strides = [1, 1]} : vector<8x24xf32> to vector<8x8xf32>
    %c0_54 = arith.constant 0 : index
    %c3_55 = arith.constant 3 : index
    %c0_56 = arith.constant 0 : index
    %c0_57 = arith.constant 0 : index
    %51 = vector.load %arg5[%c0_54, %c3_55, %c0_56, %c0_57] : memref<1x4x8x8xf32, #tpu.memory_space<vmem>>, vector<1x1x8x8xf32>
    %52 = vector.shape_cast %51 : vector<1x1x8x8xf32> to vector<8x8xf32>
    %53 = vector.shape_cast %50 : vector<8x8xf32> to vector<1x1x8x8xf32>
    tpu.vector_store %arg5[%c0_54, %c3_55, %c0_56, %c0_57], %53 {strides = array<i32>} : memref<1x4x8x8xf32, #tpu.memory_space<vmem>>, vector<1x1x8x8xf32>,
    %54 = vector.extract_strided_slice %49 {offsets = [0, 8], sizes = [8, 8], strides = [1, 1]} : vector<8x24xf32> to vector<8x8xf32>
    %c0_58 = arith.constant 0 : index
    %c3_59 = arith.constant 3 : index
    %c0_60 = arith.constant 0 : index
    %c0_61 = arith.constant 0 : index
    %55 = vector.load %arg6[%c0_58, %c3_59, %c0_60, %c0_61] : memref<1x4x8x8xf32, #tpu.memory_space<vmem>>, vector<1x1x8x8xf32>
    %56 = vector.shape_cast %55 : vector<1x1x8x8xf32> to vector<8x8xf32>
    %57 = vector.shape_cast %54 : vector<8x8xf32> to vector<1x1x8x8xf32>
    tpu.vector_store %arg6[%c0_58, %c3_59, %c0_60, %c0_61], %57 {strides = array<i32>} : memref<1x4x8x8xf32, #tpu.memory_space<vmem>>, vector<1x1x8x8xf32>,
    %58 = vector.extract_strided_slice %49 {offsets = [0, 16], sizes = [8, 8], strides = [1, 1]} : vector<8x24xf32> to vector<8x8xf32>
    %c0_62 = arith.constant 0 : index
    %c3_63 = arith.constant 3 : index
    %c0_64 = arith.constant 0 : index
    %c0_65 = arith.constant 0 : index
    %59 = vector.load %arg7[%c0_62, %c3_63, %c0_64, %c0_65] : memref<1x4x8x8xf32, #tpu.memory_space<vmem>>, vector<1x1x8x8xf32>
    %60 = vector.shape_cast %59 : vector<1x1x8x8xf32> to vector<8x8xf32>
    %61 = vector.shape_cast %58 : vector<8x8xf32> to vector<1x1x8x8xf32>
    tpu.vector_store %arg7[%c0_62, %c3_63, %c0_64, %c0_65], %61 {strides = array<i32>} : memref<1x4x8x8xf32, #tpu.memory_space<vmem>>, vector<1x1x8x8xf32>,
    return
  }
  func.func @transform_0(%arg0: i32, %arg1: i32, %arg2: i32) -> (i32, i32, i32) {
    %c0_i32 = arith.constant 0 : i32
    %c0_i32_0 = arith.constant 0 : i32
    return %arg0, %arg1, %c0_i32 : i32, i32, i32
  }
  func.func @transform_1(%arg0: i32, %arg1: i32, %arg2: i32) -> (i32, i32, i32, i32) {
    %c0_i32 = arith.constant 0 : i32
    %c0_i32_0 = arith.constant 0 : i32
    %c0_i32_1 = arith.constant 0 : i32
    %c0_i32_2 = arith.constant 0 : i32
    return %arg2, %c0_i32, %c0_i32_0, %c0_i32_1 : i32, i32, i32, i32
  }
  func.func @transform_2(%arg0: i32, %arg1: i32, %arg2: i32) -> (i32, i32, i32, i32) {
    %c0_i32 = arith.constant 0 : i32
    %c0_i32_0 = arith.constant 0 : i32
    return %arg0, %arg2, %arg1, %c0_i32 : i32, i32, i32, i32
  }
  func.func @transform_3(%arg0: i32, %arg1: i32, %arg2: i32) -> (i32, i32, i32, i32) {
    %c0_i32 = arith.constant 0 : i32
    %c0_i32_0 = arith.constant 0 : i32
    return %arg0, %arg2, %arg1, %c0_i32 : i32, i32, i32, i32
  }
  func.func @transform_4(%arg0: i32, %arg1: i32, %arg2: i32) -> (i32, i32, i32, i32) {
    %c0_i32 = arith.constant 0 : i32
    %c0_i32_0 = arith.constant 0 : i32
    return %arg0, %arg2, %arg1, %c0_i32 : i32, i32, i32, i32
  }
}

</mosaic_0001>

<bundles_post_ra>
// kernel: tpu_custom_call.1
= control target key start
LH: loop header
LB: loop body
LE: loop exit
PB: predicated region body
PF: predicated region fallthrough
CT: control target
= control target key end

     0   :  { %10 = vsyncpa [#allocation3], 0  ;;  %s1494_s0 = inlined_call_operand.vmem [shape: f32[2,8,32], index: 0, kind: input, shape index: {}]   ;;  %s1495_s1 = inlined_call_operand.vmem [shape: f32[1,4,32,24], index: 1, kind: input, shape index: {}]   ;;  %s1496_s2 = inlined_call_operand.hbm [shape: f32[2,4,8,8], index: 2, kind: output, shape index: {0}]   ;;  %s1497_s3 = inlined_call_operand.hbm [shape: f32[2,4,8,8], index: 3, kind: output, shape index: {1}]   ;;  %s1498_s4 = inlined_call_operand.hbm [shape: f32[2,4,8,8], index: 4, kind: output, shape index: {2}]  }
   0x1   :  { %12 = vsyncpa [#allocation3 + $0x1], 0 }
   0x2   :  { %13 = vsyncpa [#allocation5], 0 }
   0x3   :  { %15 = vsyncpa [#allocation5 + $0x1], 0  ;;  %s1211_s15 = smov 0   ;;  %s1213_s16 = smov 0  }
   0x4   :  { %s1215_s17 = smov 0   ;;  %s1217_s18 = smov 0  }
   0x5   :  { %s1219_s19 = smov 0   ;;  %s1221_s20 = smov 0  }
   0x6 LB: > { %s859_s21 = sadd.s32 4294967295, %s1175_s20   ;;  %s1499_s22 = sadd.s32 4294967294, %s1175_s20   ;;  %s1175_s20 = sphi %s1221_s20, %s21_s20   ;;  %s1171_s19 = sphi %s1219_s19, %s1508_s19   ;;  %s1167_s18 = sphi %s1217_s18, %s1507_s18   ;;  %s1163_s17 = sphi %s1215_s17, %s1506_s17   ;;  %s1159_s16 = sphi %s1213_s16, %s1505_s16   ;;  %s1155_s15 = sphi %s1211_s15, %s1504_s15  }
   0x7   : > { %s40_s23 = sadd.s32 1, %s1171_s19  ;;  %s105_s24 = sadd.s32 1, %s1163_s17 }
   0x8   : > { %p42_p0 = scmp.ge.s32.totalorder %s40_s23, 2  ;;  %p115_p1 = scmp.ne.s32.totalorder %s1163_s17, %s1159_s16 }
   0x9   : > { %p116_p2 = scmp.eq.s32.totalorder %s859_s21, 1  ;;  %p121_p3 = scmp.ne.s32.totalorder %s1159_s16, %s1155_s15 }
   0xa   : > { %s1510_s23 = smov (%p42_p0, %s40_s23), 0  ;;  %p122_p5 = scmp.eq.s32.totalorder %s1499_s22, 1 }
   0xb   : > { %p1253_p4 = por %p116_p2, %p115_p1  ;;  %s98_s26 = ssub.s32 %s1171_s19, %s1510_s23 }
   0xc   : > { %p864_p6 = scmp.ge.s32.totalorder %s1175_s20, 1  ;;  %p103_p7 = scmp.eq.s32.totalorder %s98_s26, 0 }
   0xd   : > { %p1262_p8 = por %p122_p5, %p121_p3  ;;  %p218_p9 = scmp.lt.s32.totalorder %s1175_s20, 3 }
   0xe   : > { %s1268_s28 = scalar_select %p103_p7, %s1163_s17, %s105_s24  }
   0xf   : > { %p219_p10 = pnand %p864_p6, %p218_p9 }
  0x10   : > { %p261_p11 = scmp.lt.s32.totalorder (!%p219_p10), %s1167_s18, 1  ;;  %s244_s12 = sand.u32 (!%p219_p10), 1, %s1159_s16  }
  0x11   : > { %222 = sbr.rel (%p219_p10) target bundleno = 387 (0x183), region = 28  ;;  %s1332_s13 = sshll.u32 (!%p219_p10), %s244_s12, 5 }
  0x12   : > { %s246_s14 = scalar_lea.vmem (!%p219_p10), [#allocation2], %s1332_s13  ;;  %s1179_s24 = smov (!%p219_p10), 120  }
  0x13   : > { %s657_s29 = sshll.u32 (!%p219_p10), %s246_s14, 4  ;;  %s1340_s30 = sshll.u32 (!%p219_p10), %s1167_s18, 9  ;;  %s1343_s29 = int_to_ptr.vmem [resolvable:$true] %s657_s29 }
  0x14   : > { %s1043_s8 = scalar_lea.vmem (!%p219_p10), %s1343_s29, 512  ;;  %s1181_s9 = smov (!%p219_p10), [#allocation2]  }
  0x15   : > { %p1044_p12 = scmp.ne.s32.totalorder (!%p219_p10), %s1343_s29, %s1043_s8  ;;  %s1047_s10 = sshll.u32 (!%p219_p10), %s1181_s9, 4  ;;  %s1048_s10 = int_to_ptr.vmem [resolvable:$false] %s1047_s10 }
  0x16   : > { %v280_v0 = vld [vmem:[%s1495_s1 + $0x18] sm:$0xff]  ;;  %v1177_v2 = vmov 0.0   ;;  %v279_v3 = vld [vmem:[%s1495_s1 + $0x10] sm:$0xff]  ;;  %s262_s11 = scalar_select %p261_p11, %s1167_s18, 1  ;;  %v278_v5 = vld [vmem:[%s1495_s1 + $0x8] sm:$0xff]  ;;  %vm1178_vm0 = vmmov 0  }
  0x17   : > { %v873_v1 = vld [vmem:[%s1495_s1 + $0x38] sm:$0xff]  ;;  %928 = vmatprep.subr.mxu0 %v1177_v2  ;;  %939 = vmatprep.subr.mxu1 %v1177_v2  ;;  %v872_v4 = vld [vmem:[%s1495_s1 + $0x30] sm:$0xff]  ;;  %v871_v6 = vld [vmem:[%s1495_s1 + $0x28] sm:$0xff]  ;;  %vm281_vm1 = vcmask 261120   ;;  %vm355_vm2 = vcmask 64512   ;;  %s1353_s18 = scalar_lea.sflag [#allocation3], %s244_s12  ;;  %p1045_p13 = pnand %p1044_p12, %p1253_p4 }
  0x18   : > { %929 = vmatpush3.msra.mxu0 %v280_v0  ;;  %940 = vmatpush3.msra.mxu1 %v873_v1  ;;  %s868_s26 = sshll.u32 %s262_s11, 3  ;;  %v277_v7 = vld [vmem:[%s1495_s1] sm:$0xff]  ;;  %v881_v10 = vld [vmem:[%s1495_s1 + $0x58] sm:$0xff]  ;;  %v880_v11 = vld [vmem:[%s1495_s1 + $0x50] sm:$0xff]  ;;  %s1049_s11 = scalar_lea.vmem %s1048_s10, 1024 }
  0x19   : > { %930 = vmatprep.subr.mxu0 %v1177_v2  ;;  %941 = vmatprep.subr.mxu1 %v1177_v2  ;;  %s267_s7 = scalar_lea.vmem %s1494_s0, %s868_s26  ;;  %v870_v9 = vld [vmem:[%s1495_s1 + $0x20] sm:$0xff]  ;;  %v889_v12 = vld [vmem:[%s1495_s1 + $0x78] sm:$0xff]  ;;  %v879_v13 = vld [vmem:[%s1495_s1 + $0x48] sm:$0xff]  ;;  %s1180_s26 = smov 112  }
  0x1a   : > { %931 = vmatpush3.msra.mxu0 %v279_v3  ;;  %942 = vmatpush3.msra.mxu1 %v872_v4  ;;  %v276_v8 = vld [vmem:[%s267_s7] sm:$0xff]  ;;  %v888_v14 = vld [vmem:[%s1495_s1 + $0x70] sm:$0xff]  ;;  %v887_v16 = vld [vmem:[%s1495_s1 + $0x68] sm:$0xff]  ;;  %s1349_s7 = scalar_lea.hbm %s1496_s2, %s1340_s30  ;;  %p1046_p0 = pneg %p1045_p13 }
  0x1b   : > { %932 = vmatprep.subr.mxu0 %v1177_v2  ;;  %943 = vmatprep.subr.mxu1 %v1177_v2  ;;  %v878_v15 = vld [vmem:[%s1495_s1 + $0x40] sm:$0xff]  ;;  %p1050_p1 = scmp.lt.s32.totalorder %s1343_s29, %s1048_s10  ;;  %p1051_p2 = scmp.lt.s32.totalorder %s1049_s11, %s1043_s8 }
  0x1c   : > { %933 = vmatpush3.msra.mxu0 %v278_v5  ;;  %936 = vmatprep.mubr.msk.f32.mxu0 %vm1178_vm0, %v1177_v2  ;;  %v886_v17 = vld [vmem:[%s1495_s1 + $0x60] sm:$0xff] }
  0x1d   : > { %934 = vmatprep.subr.mxu0 %v1177_v2  ;;  %944 = vmatpush3.msra.mxu1 %v871_v6  ;;  %p1052_p3 = por %p1051_p2, %p1050_p1 }
  0x1e   : > { %935 = vmatpush3.msra.mxu0 %v277_v7  ;;  %945 = vmatprep.subr.mxu1 %v1177_v2 }
  0x1f   : > { %937 = vmatmul.mubr.msk.f32.vlgmr.msra.gmra.mxu0 %vm281_vm1, %v276_v8  ;;  %950 = vmatprep.subr.mxu0 %v1177_v2  ;;  %p1053_p5 = pnand %p1052_p3, %p1046_p0 }
  0x20   : > { %946 = vmatpush3.msra.mxu1 %v870_v9  ;;  %947 = vmatprep.mubr.msk.f32.mxu1 %vm1178_vm0, %v1177_v2 }
  0x21   : > { %951 = vmatpush3.msra.mxu0 %v881_v10  ;;  %948 = vmatmul.mubr.msk.f32.vlgmr.msra.gmra.mxu1 %vm281_vm1, %v276_v8 }
  0x22   : > { %952 = vmatprep.subr.mxu0 %v1177_v2  ;;  %961 = vmatprep.subr.mxu1 %v1177_v2 }
  0x23   : > { %953 = vmatpush3.msra.mxu0 %v880_v11  ;;  %962 = vmatpush3.msra.mxu1 %v889_v12 }
  0x24   : > { %954 = vmatprep.subr.mxu0 %v1177_v2  ;;  %963 = vmatprep.subr.mxu1 %v1177_v2 }
  0x25   : > { %955 = vmatpush3.msra.mxu0 %v879_v13  ;;  %964 = vmatpush3.msra.mxu1 %v888_v14 }
  0x26   : > { %956 = vmatprep.subr.mxu0 %v1177_v2  ;;  %965 = vmatprep.subr.mxu1 %v1177_v2 }
  0x27   : > { %957 = vmatpush3.msra.mxu0 %v878_v15  ;;  %958 = vmatprep.mubr.msk.f32.mxu0 %vm1178_vm0, %v1177_v2 }
  0x28   : > { %966 = vmatpush3.msra.mxu1 %v887_v16  ;;  %959 = vmatmul.mubr.msk.f32.vlgmr.msra.gmra.mxu0 %vm281_vm1, %v276_v8 }
  0x29   : > { %967 = vmatprep.subr.mxu1 %v1177_v2  ;;  %969 = vmatprep.mubr.msk.f32.mxu1 %vm1178_vm0, %v1177_v2 }
  0x2a   : > { %968 = vmatpush3.msra.mxu1 %v886_v17 }
  0x2b   : > { %970 = vmatmul.mubr.msk.f32.vlgmr.msra.gmra.mxu1 %vm281_vm1, %v276_v8 }
  0xdf   : > { %v351_v18 = vpop.f32.mrf.mxu0 }
  0xe0   : > { %356 = vst.msk [vmem:[%s246_s14] sm:$0xff] %vm355_vm2, %v351_v18  ;;  %358 = vrot.lane.b32.xlu0 %v351_v18, %s1179_s24 }
  0xe1   : > { %v938_v19 = vpop.f32.mrf.mxu0  ;;  %v437_v20 = vpop.f32.mrf.mxu1 }
  0xe2   : > { %875 = vst.msk [vmem:[%s246_s14 + $0x8] sm:$0xff] %vm355_vm2, %v437_v20  ;;  %449 = vrot.lane.b32.xlu1 %v437_v20, %s1180_s26 }
  0xe3   : > { %v949_v21 = vpop.f32.mrf.mxu1 }
  0xe4   : > { %444 = vrot.lane.b32.xlu0 %v437_v20, %s1179_s24 }
  0xe8   : > { %v525_v22 = vpop.f32.mrf.mxu0  ;;  %362 = vrot.lane.b32.xlu0 %v351_v18, %s1180_s26 }
  0xe9   : > { %883 = vst.msk [vmem:[%s246_s14 + $0x10] sm:$0xff] %vm355_vm2, %v525_v22  ;;  %532 = vrot.lane.b32.xlu1 %v525_v22, %s1179_s24 }
  0xea   : > { %v960_v23 = vpop.f32.mrf.mxu0 }
  0xeb   : > { %v613_v24 = vpop.f32.mrf.mxu1 }
  0xec   : > { %891 = vst.msk [vmem:[%s246_s14 + $0x18] sm:$0xff] %vm355_vm2, %v613_v24  ;;  %537 = vrot.lane.b32.xlu0 %v525_v22, %s1180_s26 }
  0xed   : > { %v971_v25 = vpop.f32.mrf.mxu1  ;;  %620 = vrot.lane.b32.xlu1 %v613_v24, %s1179_s24 }
  0xee   : > { %1056 = shalt.err (!%p1053_p5)
}
  0xef   : > { %s1057_s12 = scalar_lea.hbm %s1349_s7, 512  ;;  %s1061_s5 = scalar_lea.hbm %s1496_s2, 1024 }
  0xf0   : > { %p1058_p6 = scmp.ne.s32.totalorder %s1349_s7, %s1057_s12  ;;  %p1062_p10 = scmp.lt.s32.totalorder %s1349_s7, %s1496_s2 }
  0xf1   : > { %p1063_p11 = scmp.lt.s32.totalorder %s1061_s5, %s1057_s12 }
  0xf2   : > { %p1059_p7 = pnand %p1058_p6, %p1253_p4 }
  0xf3   : > { %p1064_p12 = por %p1063_p11, %p1062_p10 }
  0xf4   : > { %p1060_p9 = pneg %p1059_p7 }
  0xf6   : > { %p1065_p13 = pnand %p1064_p12, %p1060_p9 }
  0xf8   : > { %1068 = shalt.err (!%p1065_p13)
}
  0xf9   : > { %s1182_s8 = smov 128   ;;  %s1183_s10 = smov 8   ;;  %625 = vrot.lane.b32.xlu1 %v613_v24, %s1180_s26 }
  0xfa   : > { %972 = dma.vmem_to_hbm [thread:$0]  (%p1253_p4), %s1343_s29, 512, %s1349_s7, %s1353_s18, %s1182_s8, %s1182_s8, %s1183_s10  }
  0xfb   : > { %s253_s11 = scalar_lea.vmem [#allocation4], %s1332_s13  ;;  %s1383_s12 = scalar_lea.vmem [#allocation6], %s1332_s13 }
  0xfc   : > { %s676_s29 = sshll.u32 %s253_s11, 4  ;;  %s1392_s26 = sand.u32 1, %s859_s21   ;;  %s1395_s29 = int_to_ptr.vmem [resolvable:$true] %s676_s29 }
  0xfd   : > { %s1401_s18 = scalar_lea.hbm %s1497_s3, %s1340_s30  ;;  %s636_s21 = scalar_lea.sflag [#allocation5], %s1392_s26 }
  0xfe   : > { %s1069_s24 = scalar_lea.vmem %s1395_s29, 512  ;;  %s1184_s5 = smov [#allocation4]  }
  0xff   : > { %p1070_p0 = scmp.ne.s32.totalorder %s1395_s29, %s1069_s24  ;;  %s1073_s6 = sshll.u32 %s1184_s5, 4  ;;  %s1074_s6 = int_to_ptr.vmem [resolvable:$false] %s1073_s6 }
 0x100   : > { %s1075_s9 = scalar_lea.vmem %s1074_s6, 1024  ;;  %p1076_p3 = scmp.lt.s32.totalorder %s1395_s29, %s1074_s6 }
 0x101   : > { %p1071_p1 = pnand %p1070_p0, %p1253_p4  ;;  %p1077_p5 = scmp.lt.s32.totalorder %s1075_s9, %s1069_s24 }
 0x103   : > { %p1072_p2 = pneg %p1071_p1  ;;  %p1078_p6 = por %p1077_p5, %p1076_p3 }
 0x105   : > { %p1079_p7 = pnand %p1078_p6, %p1072_p2 }
 0x152   : > { %v359_v26 = vpop.permute.xlu0 %358 }
 0x153   : > { %361 = vst.msk [vmem:[%s253_s11] sm:$0xff] %vm355_vm2, %v359_v26 }
 0x154   : > { %v450_v27 = vpop.permute.xlu1 %449 }
 0x155   : > { %877 = vst.msk [vmem:[%s1383_s12 + $0x8] sm:$0xff] %vm355_vm2, %v450_v27 }
 0x156   : > { %v445_v28 = vpop.permute.xlu0 %444 }
 0x157   : > { %876 = vst.msk [vmem:[%s253_s11 + $0x8] sm:$0xff] %vm355_vm2, %v445_v28 }
 0x15a   : > { %v363_v29 = vpop.permute.xlu0 %362 }
 0x15b   : > { %365 = vst.msk [vmem:[%s1383_s12] sm:$0xff] %vm355_vm2, %v363_v29  ;;  %v533_v30 = vpop.permute.xlu1 %532 }
 0x15c   : > { %884 = vst.msk [vmem:[%s253_s11 + $0x10] sm:$0xff] %vm355_vm2, %v533_v30 }
 0x15e   : > { %v538_v31 = vpop.permute.xlu0 %537 }
 0x15f   : > { %885 = vst.msk [vmem:[%s1383_s12 + $0x10] sm:$0xff] %vm355_vm2, %v538_v31  ;;  %v621_v32 = vpop.permute.xlu1 %620 }
 0x160   : > { %892 = vst.msk [vmem:[%s253_s11 + $0x18] sm:$0xff] %vm355_vm2, %v621_v32 }
 0x161   : > { %1082 = shalt.err (!%p1079_p7)
}
 0x162   : > { %s1083_s11 = scalar_lea.hbm %s1401_s18, 512  ;;  %s1087_s5 = scalar_lea.hbm %s1497_s3, 1024 }
 0x163   : > { %p1084_p9 = scmp.ne.s32.totalorder %s1401_s18, %s1083_s11  ;;  %p1088_p12 = scmp.lt.s32.totalorder %s1401_s18, %s1497_s3 }
 0x164   : > { %p1089_p13 = scmp.lt.s32.totalorder %s1087_s5, %s1083_s11 }
 0x165   : > { %p1085_p10 = pnand %p1084_p9, %p1253_p4 }
 0x166   : > { %p1090_p0 = por %p1089_p13, %p1088_p12 }
 0x167   : > { %p1086_p11 = pneg %p1085_p10 }
 0x169   : > { %p1091_p1 = pnand %p1090_p0, %p1086_p11 }
 0x16b   : > { %1094 = shalt.err (!%p1091_p1)
}
 0x16c   : > { %973 = dma.vmem_to_hbm [thread:$0]  (%p1253_p4), %s1395_s29, 512, %s1401_s18, %s636_s21, %s1182_s8, %s1182_s8, %s1183_s10   ;;  %v626_v33 = vpop.permute.xlu1 %625 }
 0x16d   : > { %s1502_s22 = sshll.u32 %s1383_s12, 4  ;;  %s1441_s6 = scalar_lea.hbm %s1498_s4, %s1340_s30  ;;  %893 = vst.msk [vmem:[%s1383_s12 + $0x18] sm:$0xff] %vm355_vm2, %v626_v33  ;;  %s1435_s22 = int_to_ptr.vmem [resolvable:$true] %s1502_s22 }
 0x16e   : > { %s1095_s9 = scalar_lea.vmem %s1435_s22, 512  ;;  %s1185_s29 = smov [#allocation6]  }
 0x16f   : > { %p1096_p2 = scmp.ne.s32.totalorder %s1435_s22, %s1095_s9  ;;  %s1099_s18 = sshll.u32 %s1185_s29, 4  ;;  %s1100_s18 = int_to_ptr.vmem [resolvable:$false] %s1099_s18 }
 0x170   : > { %s1101_s11 = scalar_lea.vmem %s1100_s18, 1024  ;;  %p1102_p6 = scmp.lt.s32.totalorder %s1435_s22, %s1100_s18 }
 0x171   : > { %p1097_p3 = pnand %p1096_p2, %p1253_p4  ;;  %p1103_p7 = scmp.lt.s32.totalorder %s1101_s11, %s1095_s9 }
 0x173   : > { %p1098_p5 = pneg %p1097_p3  ;;  %p1104_p9 = por %p1103_p7, %p1102_p6 }
 0x175   : > { %p1105_p10 = pnand %p1104_p9, %p1098_p5 }
 0x177   : > { %1108 = shalt.err (!%p1105_p10)
}
 0x178   : > { %s1109_s30 = scalar_lea.hbm %s1441_s6, 512  ;;  %s1113_s7 = scalar_lea.hbm %s1498_s4, 1024 }
 0x179   : > { %p1110_p11 = scmp.ne.s32.totalorder %s1441_s6, %s1109_s30  ;;  %p1114_p0 = scmp.lt.s32.totalorder %s1441_s6, %s1498_s4 }
 0x17a   : > { %p1115_p1 = scmp.lt.s32.totalorder %s1113_s7, %s1109_s30 }
 0x17b   : > { %p1111_p12 = pnand %p1110_p11, %p1253_p4 }
 0x17c   : > { %p1116_p2 = por %p1115_p1, %p1114_p0 }
 0x17d   : > { %p1112_p13 = pneg %p1111_p12 }
 0x17f   : > { %p1117_p3 = pnand %p1116_p2, %p1112_p13 }
 0x181   : > { %1120 = shalt.err (!%p1117_p3)
}
 0x182   : > { %974 = dma.vmem_to_hbm [thread:$0]  (%p1253_p4), %s1435_s22, 512, %s1441_s6, %s636_s21, %s1182_s8, %s1182_s8, %s1183_s10  }
 0x183 PF: > { %p988_p5 = scmp.ge.s32.totalorder %s1175_s20, 2  ;;  %s710_s24 = sand.u32 1, %s1155_s15  }
 0x184   : > { %s711_s9 = scalar_lea.sflag [#allocation3], %s710_s24 }
 0x185   : > { %p979_p6 = pnand %p988_p5, %p1262_p8 }
 0x187   : > { %p980_p7 = pneg %p979_p6 }
 0x189   : > { %1146 = dma.done.wait (%p980_p7), %s711_s9, 512  }
 0x18a   : > { %1148 = vsyncadd (%p980_p7), %s711_s9, 4294966784  ;;  %s1503_s25 = sadd.s32 4294967294, %s1175_s20  }
 0x18b   : > { %s719_s29 = sand.u32 1, %s1503_s25  }
 0x18c   : > { %s720_s18 = scalar_lea.sflag [#allocation5], %s719_s29 }
 0x18d   : > { %1150 = dma.done.wait (%p980_p7), %s720_s18, 1024  }
 0x18e   : > { %1152 = vsyncadd (%p980_p7), %s720_s18, 4294966272  ;;  %s21_s20 = sadd.s32 1, %s1175_s20   ;;  %s1504_s15 = smov %s1159_s16 }
 0x18f   : > { %p18_p4 = scmp.ge.s32.totalorder %s21_s20, 4   ;;  %s1505_s16 = smov %s1163_s17 }
 0x190   : > { %s1506_s17 = smov %s1268_s28  ;;  %s1507_s18 = smov %s1171_s19 }
 0x191   : > { %s1508_s19 = smov %s1510_s23  ;;  %20 = sbr.rel (!%p18_p4) target bundleno = 6 (0x6), region = 110 }
 0x196   :  { %734 = vsyncpa [#allocation3], 1 }
 0x197   :  { %736 = vsyncpa [#allocation3 + $0x1], 1 }
 0x198   :  { %737 = vsyncpa [#allocation5], 1 }
 0x199   :  { %739 = vsyncpa [#allocation5 + $0x1], 1 }

</bundles_post_ra>
